<compile_context>
chip_gen: v6e
topology: v6e:2x2x1
jax: 0.10.0
libtpu: 0.0.40
codegen_flags: <defaults>
</compile_context>

<pallas_src>
import functools

import jax
import jax.numpy as jnp
from jax.experimental import pallas as pl
from jax.experimental.pallas import tpu as pltpu


# ----------------------------------------------------------------------------
# Fused Pallas kernel: conv1(+BN+ReLU) -> conv2(+BN+ReLU) -> conv3(+bias)
# ----------------------------------------------------------------------------
def _conv_encoder_kernel(x_ref, w1_ref, s1_ref, w2_ref, s2_ref, w3_ref, s3_ref,
                         o_ref, a1_ref, *, G, t1u, t2, c0, c1, mxu_dtype):
    f32 = jnp.float32
    md = mxu_dtype

    # ---- layer 1: Conv1d(k=5, s=2, p=2) + folded BN + ReLU ------------------
    # Taps folded into K (K = 5*c0), batch folded into M (M = G*t1u).
    # Input arrives with even/odd time phases folded into lanes, so the tap-k
    # slice is a contiguous sublane window of phase (k % 2).
    slabs = []
    for g in range(G):
        taps = [x_ref[g, pl.ds(k // 2, t1u), (k % 2) * c0:(k % 2 + 1) * c0]
                for k in range(5)]
        slabs.append(jnp.concatenate(taps, axis=-1))             # (t1u, 5*c0)
    xcat = jnp.concatenate(slabs, axis=0)                         # (G*t1u, 5*c0)
    a1 = jnp.dot(xcat.astype(md), w1_ref[...].astype(md),
                 preferred_element_type=f32)
    a1_ref[...] = jnp.maximum(a1 + s1_ref[...], 0.0)              # (G*t1u, c1)

    # ---- layer 2: Conv1d(k=5, s=5) + folded BN + ReLU -----------------------
    # stride == kernel: one strided load per tap (t1u = 5*t2, so the stride-5
    # read folds seamlessly across the G batch elements), K = 5*c1, M = G*t2.
    x2 = jnp.concatenate(
        [a1_ref[pl.ds(k, G * t2, stride=5), :] for k in range(5)], axis=-1)
    a2 = jnp.dot(x2.astype(md), w2_ref[...].astype(md),
                 preferred_element_type=f32)
    a2 = jnp.maximum(a2 + s2_ref[...], 0.0)                       # (G*t2, c1)

    # ---- layer 3: Conv1d(k=3, s=1, 'same') + bias ---------------------------
    # Keep a2 as a register value; per-batch 'same' zero rows are added with a
    # tiny concat (no scratch round trip).  K = 3*c1, M = G*t2.
    zero_row = jnp.zeros((1, c1), f32)
    slabs3 = []
    for g in range(G):
        a2g = a2[g * t2:(g + 1) * t2, :]
        a2p = jnp.concatenate([zero_row, a2g, zero_row], axis=0)  # (t2+2, c1)
        slabs3.append(jnp.concatenate([a2p[k:k + t2, :] for k in range(3)],
                                      axis=-1))                   # (t2, 3*c1)
    x3 = jnp.concatenate(slabs3, axis=0)                          # (G*t2, 3*c1)
    a3 = jnp.dot(x3.astype(md), w3_ref[...].astype(md),
                 preferred_element_type=f32)
    y = (a3 + s3_ref[...]).astype(o_ref.dtype)                    # (G*t2, c2)
    for g in range(G):
        o_ref[g] = y[g * t2:(g + 1) * t2, :]


# ----------------------------------------------------------------------------
# Parameter prep
# ----------------------------------------------------------------------------
def _fold_bn(b, gamma, beta, mean, var, eps=1e-5):
    scale = gamma * jax.lax.rsqrt(var + eps)
    shift = (b - mean) * scale + beta
    return scale, shift


def _prep_weight(w, scale):
    """(C_out, C_in, K) torch conv weight -> (K*C_in, C_out) im2col weight,
    with the per-output-channel BN scale folded in."""
    c_out, c_in, k = w.shape
    wk = jnp.transpose(w, (2, 1, 0)).astype(jnp.float32) * scale[None, None, :]
    return wk.reshape(k * c_in, c_out)


# ----------------------------------------------------------------------------
# Wrapper: layout prep + single pallas_call
# ----------------------------------------------------------------------------
def conv_encoder_forward(x, params, *, batch_block=8, use_bf16_mxu=False):
    """x: (B, n_mels, T) -> (B, T_out, d_model); matches cnn(x).permute(0,2,1)."""
    p = params
    B, c0, T = x.shape
    c1 = p["w2"].shape[0]           # n_channels
    c2 = p["w3"].shape[0]           # d_model

    t1 = (T + 2 * 2 - 5) // 2 + 1   # conv1: k=5, s=2, p=2
    t2 = (t1 - 5) // 5 + 1          # conv2: k=5, s=5   (conv3 is 'same' -> t2)
    assert t2 >= 1, "input too short for ConvEncoder"
    t1u = 5 * t2                    # layer-1 rows that layer 2 actually consumes
    Th = t1u + 2                    # phase rows needed by the 5 stride-2 taps
    T_pad = 2 * Th

    # NCT -> NTC, left pad 2 (conv1 padding), right pad just enough for the
    # taps of the t1u used outputs; fold even/odd time phases into lanes with
    # a free contiguous reshape (no channel padding, no HBM phase-split copy).
    xt = jnp.transpose(x, (0, 2, 1)).astype(jnp.float32)
    pad_r = max(0, T_pad - (T + 2))
    xt = jnp.pad(xt, ((0, 0), (2, pad_r), (0, 0)))[:, :T_pad, :]
    xr = xt.reshape(B, Th, 2 * c0)

    # Batch blocking: fold G elements into the matmul M dim, but keep >= 2
    # grid steps when possible so both v7x TensorCores get work.
    G = max(1, min(batch_block, B))
    if B >= 2 and (B + G - 1) // G < 2:
        G = max(1, B // 2)
    Bp = ((B + G - 1) // G) * G
    if Bp != B:
        xr = jnp.pad(xr, ((0, Bp - B), (0, 0), (0, 0)))

    # Fold eval-mode BatchNorm into the conv weights; only per-channel shifts
    # enter the kernel.
    sc1, sh1 = _fold_bn(p["b1"], p["g1"], p["be1"], p["m1"], p["v1"])
    sc2, sh2 = _fold_bn(p["b2"], p["g2"], p["be2"], p["m2"], p["v2"])
    w1 = _prep_weight(p["w1"], sc1)                              # (5*c0, c1)
    w2 = _prep_weight(p["w2"], sc2)                              # (5*c1, c1)
    w3 = _prep_weight(p["w3"], jnp.ones((c2,), jnp.float32))     # (3*c1, c2)
    s1 = sh1.astype(jnp.float32)[None, :]
    s2 = sh2.astype(jnp.float32)[None, :]
    s3 = p["b3"].astype(jnp.float32)[None, :]

    mxu_dtype = jnp.bfloat16 if use_bf16_mxu else jnp.float32

    kernel = functools.partial(_conv_encoder_kernel, G=G, t1u=t1u, t2=t2,
                               c0=c0, c1=c1, mxu_dtype=mxu_dtype)

    out = pl.pallas_call(
        kernel,
        out_shape=jax.ShapeDtypeStruct((Bp, t2, c2), jnp.float32),
        grid=(Bp // G,),
        in_specs=[
            pl.BlockSpec((G, Th, 2 * c0), lambda b: (b, 0, 0)),   # input block
            pl.BlockSpec((5 * c0, c1), lambda b: (0, 0)),         # W1 (im2col)
            pl.BlockSpec((1, c1), lambda b: (0, 0)),              # shift1
            pl.BlockSpec((5 * c1, c1), lambda b: (0, 0)),         # W2 (im2col)
            pl.BlockSpec((1, c1), lambda b: (0, 0)),              # shift2
            pl.BlockSpec((3 * c1, c2), lambda b: (0, 0)),         # W3 (im2col)
            pl.BlockSpec((1, c2), lambda b: (0, 0)),              # shift3
        ],
        out_specs=pl.BlockSpec((G, t2, c2), lambda b: (b, 0, 0)),
        scratch_shapes=[pltpu.VMEM((G * t1u, c1), jnp.float32)],  # layer-1 act
        compiler_params=pltpu.CompilerParams(
            dimension_semantics=("parallel",),
            vmem_limit_bytes=32 * 1024 * 1024),
    )(xr, w1, s1, w2, s2, w3, s3)

    return out[:B]                                               # (B, t2, d_model)


# ----------------------------------------------------------------------------
# Pure-JAX reference (correctness check)
# ----------------------------------------------------------------------------
def _ref_conv1d(x, w, b, stride, pad):
    y = jax.lax.conv_general_dilated(
        x, w, window_strides=(stride,), padding=[(pad, pad)],
        dimension_numbers=("NCH", "OIH", "NCH"))
    return y + b[None, :, None]


def conv_encoder_reference(x, p):
    eps = 1e-5
    h = _ref_conv1d(x, p["w1"], p["b1"], 2, 2)
    h = (h - p["m1"][None, :, None]) / jnp.sqrt(p["v1"][None, :, None] + eps)
    h = h * p["g1"][None, :, None] + p["be1"][None, :, None]
    h = jnp.maximum(h, 0.0)
    h = _ref_conv1d(h, p["w2"], p["b2"], 5, 0)
    h = (h - p["m2"][None, :, None]) / jnp.sqrt(p["v2"][None, :, None] + eps)
    h = h * p["g2"][None, :, None] + p["be2"][None, :, None]
    h = jnp.maximum(h, 0.0)
    h = _ref_conv1d(h, p["w3"], p["b3"], 1, 1)
    return h.transpose(0, 2, 1)


# ----------------------------------------------------------------------------
# Main
# ----------------------------------------------------------------------------
if __name__ == "__main__":
    B, n_mels, n_channels, d_model, T = 2, 16, 32, 32, 40

    key = jax.random.PRNGKey(0)
    ks = jax.random.split(key, 16)

    def normal(k, shape, s=0.1):
        return jax.random.normal(k, shape, jnp.float32) * s

    params = {
        # layer 1: Conv1d(n_mels, n_channels, 5, stride=2, pad=2) + BN
        "w1": normal(ks[0], (n_channels, n_mels, 5)),
        "b1": normal(ks[1], (n_channels,)),
        "g1": 1.0 + normal(ks[2], (n_channels,)),
        "be1": normal(ks[3], (n_channels,)),
        "m1": normal(ks[4], (n_channels,)),
        "v1": jax.random.uniform(ks[5], (n_channels,), jnp.float32, 0.5, 1.5),
        # layer 2: Conv1d(n_channels, n_channels, 5, stride=5) + BN
        "w2": normal(ks[6], (n_channels, n_channels, 5)),
        "b2": normal(ks[7], (n_channels,)),
        "g2": 1.0 + normal(ks[8], (n_channels,)),
        "be2": normal(ks[9], (n_channels,)),
        "m2": normal(ks[10], (n_channels,)),
        "v2": jax.random.uniform(ks[11], (n_channels,), jnp.float32, 0.5, 1.5),
        # layer 3: Conv1d(n_channels, d_model, 3, padding='same')
        "w3": normal(ks[12], (d_model, n_channels, 3)),
        "b3": normal(ks[13], (d_model,)),
    }

    x = jax.random.normal(ks[14], (B, n_mels, T), jnp.float32)

    out = jax.block_until_ready(conv_encoder_forward(x, params))
    ref = jax.block_until_ready(conv_encoder_reference(x, params))

    # T=40 -> conv1: 20 -> conv2: 4 -> conv3 ('same'): 4 ; output (B, 4, d_model)
    assert out.shape == (B, 4, d_model), out.shape
    assert jnp.allclose(out, ref, rtol=1e-4, atol=1e-4), float(jnp.abs(out - ref).max())

    print("KERNEL_OK")
</pallas_src>

<mosaic_0001>
module attributes {stable_mosaic.version = 11 : i64} {
  func.func @_conv_encoder_kernel(%arg0: i32, %arg1: memref<1x22x32xf32, #tpu.memory_space<vmem>>, %arg2: memref<80x32xf32, #tpu.memory_space<vmem>>, %arg3: memref<1x32xf32, #tpu.memory_space<vmem>>, %arg4: memref<160x32xf32, #tpu.memory_space<vmem>>, %arg5: memref<1x32xf32, #tpu.memory_space<vmem>>, %arg6: memref<96x32xf32, #tpu.memory_space<vmem>>, %arg7: memref<1x32xf32, #tpu.memory_space<vmem>>, %arg8: memref<1x4x32xf32, #tpu.memory_space<vmem>>, %arg9: memref<20x32xf32, #tpu.memory_space<vmem>>) attributes {dimension_semantics = [#tpu.dimension_semantics<parallel>], iteration_bounds = array<i64: 2>, scalar_prefetch = 0 : i64, scratch_operands = 1 : i64, tpu.core_type = #tpu.core_type<tc>, window_params = [{transform_indices = @transform_0, window_bounds = array<i64: 1, 22, 32>}, {pipeline_mode = #tpu.pipeline_mode<synchronous>, transform_indices = @transform_1, window_bounds = array<i64: 80, 32>}, {pipeline_mode = #tpu.pipeline_mode<synchronous>, transform_indices = @transform_2, window_bounds = array<i64: 1, 32>}, {pipeline_mode = #tpu.pipeline_mode<synchronous>, transform_indices = @transform_3, window_bounds = array<i64: 160, 32>}, {pipeline_mode = #tpu.pipeline_mode<synchronous>, transform_indices = @transform_4, window_bounds = array<i64: 1, 32>}, {pipeline_mode = #tpu.pipeline_mode<synchronous>, transform_indices = @transform_5, window_bounds = array<i64: 96, 32>}, {pipeline_mode = #tpu.pipeline_mode<synchronous>, transform_indices = @transform_6, window_bounds = array<i64: 1, 32>}, {transform_indices = @transform_7, window_bounds = array<i64: 1, 4, 32>}]} {
    %c0 = arith.constant 0 : index
    %c0_0 = arith.constant 0 : index
    %c0_1 = arith.constant 0 : index
    %0 = vector.load %arg1[%c0, %c0_0, %c0_1] : memref<1x22x32xf32, #tpu.memory_space<vmem>>, vector<1x20x16xf32>
    %1 = vector.shape_cast %0 : vector<1x20x16xf32> to vector<20x16xf32>
    %c0_2 = arith.constant 0 : index
    %c0_3 = arith.constant 0 : index
    %c16 = arith.constant 16 : index
    %2 = vector.load %arg1[%c0_2, %c0_3, %c16] : memref<1x22x32xf32, #tpu.memory_space<vmem>>, vector<1x20x16xf32>
    %3 = vector.shape_cast %2 : vector<1x20x16xf32> to vector<20x16xf32>
    %c0_4 = arith.constant 0 : index
    %c1 = arith.constant 1 : index
    %c0_5 = arith.constant 0 : index
    %4 = vector.load %arg1[%c0_4, %c1, %c0_5] : memref<1x22x32xf32, #tpu.memory_space<vmem>>, vector<1x20x16xf32>
    %5 = vector.shape_cast %4 : vector<1x20x16xf32> to vector<20x16xf32>
    %c0_6 = arith.constant 0 : index
    %c1_7 = arith.constant 1 : index
    %c16_8 = arith.constant 16 : index
    %6 = vector.load %arg1[%c0_6, %c1_7, %c16_8] : memref<1x22x32xf32, #tpu.memory_space<vmem>>, vector<1x20x16xf32>
    %7 = vector.shape_cast %6 : vector<1x20x16xf32> to vector<20x16xf32>
    %c0_9 = arith.constant 0 : index
    %c2 = arith.constant 2 : index
    %c0_10 = arith.constant 0 : index
    %8 = vector.load %arg1[%c0_9, %c2, %c0_10] : memref<1x22x32xf32, #tpu.memory_space<vmem>>, vector<1x20x16xf32>
    %9 = vector.shape_cast %8 : vector<1x20x16xf32> to vector<20x16xf32>
    %10 = tpu.concatenate %1, %3, %5, %7, %9 in 1 : vector<20x16xf32>, vector<20x16xf32>, vector<20x16xf32>, vector<20x16xf32>, vector<20x16xf32> -> vector<20x80xf32>
    %c0_11 = arith.constant 0 : index
    %c0_12 = arith.constant 0 : index
    %11 = vector.load %arg2[%c0_11, %c0_12] : memref<80x32xf32, #tpu.memory_space<vmem>>, vector<80x32xf32>
    %cst = arith.constant dense<0.000000e+00> : vector<20x32xf32>
    %12 = tpu.matmul %10, %11, %cst {dimension_numbers = #tpu.dot_dimension_numbers<[1], [0], [0], [1], [0, 0, 1, 1], [], []>} : vector<20x80xf32>, vector<80x32xf32>, vector<20x32xf32> -> vector<20x32xf32>
    %c0_13 = arith.constant 0 : index
    %c0_14 = arith.constant 0 : index
    %13 = vector.load %arg3[%c0_13, %c0_14] : memref<1x32xf32, #tpu.memory_space<vmem>>, vector<1x32xf32>
    %14 = vector.broadcast %13 : vector<1x32xf32> to vector<20x32xf32>
    %15 = arith.addf %12, %14 : vector<20x32xf32>
    %cst_15 = arith.constant 0.000000e+00 : f32
    %16 = vector.broadcast %cst_15 : f32 to vector<20x32xf32>
    %17 = arith.maximumf %15, %16 : vector<20x32xf32>
    %c0_16 = arith.constant 0 : index
    %c0_17 = arith.constant 0 : index
    %18 = vector.load %arg9[%c0_16, %c0_17] : memref<20x32xf32, #tpu.memory_space<vmem>>, vector<20x32xf32>
    tpu.vector_store %arg9[%c0_16, %c0_17], %17 {strides = array<i32>} : memref<20x32xf32, #tpu.memory_space<vmem>>, vector<20x32xf32>,
    %c0_18 = arith.constant 0 : index
    %c0_19 = arith.constant 0 : index
    %19 = tpu.strided_load %arg9[%c0_18, %c0_19] {strides = array<i32: 5, 1>} : memref<20x32xf32, #tpu.memory_space<vmem>>, vector<4x32xf32>
    %c1_20 = arith.constant 1 : index
    %c0_21 = arith.constant 0 : index
    %20 = tpu.strided_load %arg9[%c1_20, %c0_21] {strides = array<i32: 5, 1>} : memref<20x32xf32, #tpu.memory_space<vmem>>, vector<4x32xf32>
    %c2_22 = arith.constant 2 : index
    %c0_23 = arith.constant 0 : index
    %21 = tpu.strided_load %arg9[%c2_22, %c0_23] {strides = array<i32: 5, 1>} : memref<20x32xf32, #tpu.memory_space<vmem>>, vector<4x32xf32>
    %c3 = arith.constant 3 : index
    %c0_24 = arith.constant 0 : index
    %22 = tpu.strided_load %arg9[%c3, %c0_24] {strides = array<i32: 5, 1>} : memref<20x32xf32, #tpu.memory_space<vmem>>, vector<4x32xf32>
    %c4 = arith.constant 4 : index
    %c0_25 = arith.constant 0 : index
    %23 = tpu.strided_load %arg9[%c4, %c0_25] {strides = array<i32: 5, 1>} : memref<20x32xf32, #tpu.memory_space<vmem>>, vector<4x32xf32>
    %24 = tpu.concatenate %19, %20, %21, %22, %23 in 1 : vector<4x32xf32>, vector<4x32xf32>, vector<4x32xf32>, vector<4x32xf32>, vector<4x32xf32> -> vector<4x160xf32>
    %c0_26 = arith.constant 0 : index
    %c0_27 = arith.constant 0 : index
    %25 = vector.load %arg4[%c0_26, %c0_27] : memref<160x32xf32, #tpu.memory_space<vmem>>, vector<160x32xf32>
    %cst_28 = arith.constant dense<0.000000e+00> : vector<4x32xf32>
    %26 = tpu.matmul %24, %25, %cst_28 {dimension_numbers = #tpu.dot_dimension_numbers<[1], [0], [0], [1], [0, 0, 1, 1], [], []>} : vector<4x160xf32>, vector<160x32xf32>, vector<4x32xf32> -> vector<4x32xf32>
    %c0_29 = arith.constant 0 : index
    %c0_30 = arith.constant 0 : index
    %27 = vector.load %arg5[%c0_29, %c0_30] : memref<1x32xf32, #tpu.memory_space<vmem>>, vector<1x32xf32>
    %28 = vector.broadcast %27 : vector<1x32xf32> to vector<4x32xf32>
    %29 = arith.addf %26, %28 : vector<4x32xf32>
    %cst_31 = arith.constant 0.000000e+00 : f32
    %30 = vector.broadcast %cst_31 : f32 to vector<4x32xf32>
    %31 = arith.maximumf %29, %30 : vector<4x32xf32>
    %cst_32 = arith.constant 0.000000e+00 : f32
    %32 = vector.broadcast %cst_32 : f32 to vector<1x32xf32>
    %33 = tpu.concatenate %32, %31, %32 in 0 : vector<1x32xf32>, vector<4x32xf32>, vector<1x32xf32> -> vector<6x32xf32>
    %34 = vector.extract_strided_slice %33 {offsets = [0, 0], sizes = [4, 32], strides = [1, 1]} : vector<6x32xf32> to vector<4x32xf32>
    %35 = vector.extract_strided_slice %33 {offsets = [1, 0], sizes = [4, 32], strides = [1, 1]} : vector<6x32xf32> to vector<4x32xf32>
    %36 = vector.extract_strided_slice %33 {offsets = [2, 0], sizes = [4, 32], strides = [1, 1]} : vector<6x32xf32> to vector<4x32xf32>
    %37 = tpu.concatenate %34, %35, %36 in 1 : vector<4x32xf32>, vector<4x32xf32>, vector<4x32xf32> -> vector<4x96xf32>
    %c0_33 = arith.constant 0 : index
    %c0_34 = arith.constant 0 : index
    %38 = vector.load %arg6[%c0_33, %c0_34] : memref<96x32xf32, #tpu.memory_space<vmem>>, vector<96x32xf32>
    %cst_35 = arith.constant dense<0.000000e+00> : vector<4x32xf32>
    %39 = tpu.matmul %37, %38, %cst_35 {dimension_numbers = #tpu.dot_dimension_numbers<[1], [0], [0], [1], [0, 0, 1, 1], [], []>} : vector<4x96xf32>, vector<96x32xf32>, vector<4x32xf32> -> vector<4x32xf32>
    %c0_36 = arith.constant 0 : index
    %c0_37 = arith.constant 0 : index
    %40 = vector.load %arg7[%c0_36, %c0_37] : memref<1x32xf32, #tpu.memory_space<vmem>>, vector<1x32xf32>
    %41 = vector.broadcast %40 : vector<1x32xf32> to vector<4x32xf32>
    %42 = arith.addf %39, %41 : vector<4x32xf32>
    %c0_38 = arith.constant 0 : index
    %c0_39 = arith.constant 0 : index
    %c0_40 = arith.constant 0 : index
    %43 = vector.load %arg8[%c0_38, %c0_39, %c0_40] : memref<1x4x32xf32, #tpu.memory_space<vmem>>, vector<1x4x32xf32>
    %44 = vector.shape_cast %43 : vector<1x4x32xf32> to vector<4x32xf32>
    %45 = vector.shape_cast %42 : vector<4x32xf32> to vector<1x4x32xf32>
    tpu.vector_store %arg8[%c0_38, %c0_39, %c0_40], %45 {strides = array<i32>} : memref<1x4x32xf32, #tpu.memory_space<vmem>>, vector<1x4x32xf32>,
    return
  }
  func.func @transform_0(%arg0: i32) -> (i32, i32, i32) {
    %c0_i32 = arith.constant 0 : i32
    %c0_i32_0 = arith.constant 0 : i32
    %c0_i32_1 = arith.constant 0 : i32
    return %arg0, %c0_i32, %c0_i32_0 : i32, i32, i32
  }
  func.func @transform_1(%arg0: i32) -> (i32, i32) {
    %c0_i32 = arith.constant 0 : i32
    %c0_i32_0 = arith.constant 0 : i32
    %c0_i32_1 = arith.constant 0 : i32
    return %c0_i32, %c0_i32_0 : i32, i32
  }
  func.func @transform_2(%arg0: i32) -> (i32, i32) {
    %c0_i32 = arith.constant 0 : i32
    %c0_i32_0 = arith.constant 0 : i32
    %c0_i32_1 = arith.constant 0 : i32
    return %c0_i32, %c0_i32_0 : i32, i32
  }
  func.func @transform_3(%arg0: i32) -> (i32, i32) {
    %c0_i32 = arith.constant 0 : i32
    %c0_i32_0 = arith.constant 0 : i32
    %c0_i32_1 = arith.constant 0 : i32
    return %c0_i32, %c0_i32_0 : i32, i32
  }
  func.func @transform_4(%arg0: i32) -> (i32, i32) {
    %c0_i32 = arith.constant 0 : i32
    %c0_i32_0 = arith.constant 0 : i32
    %c0_i32_1 = arith.constant 0 : i32
    return %c0_i32, %c0_i32_0 : i32, i32
  }
  func.func @transform_5(%arg0: i32) -> (i32, i32) {
    %c0_i32 = arith.constant 0 : i32
    %c0_i32_0 = arith.constant 0 : i32
    %c0_i32_1 = arith.constant 0 : i32
    return %c0_i32, %c0_i32_0 : i32, i32
  }
  func.func @transform_6(%arg0: i32) -> (i32, i32) {
    %c0_i32 = arith.constant 0 : i32
    %c0_i32_0 = arith.constant 0 : i32
    %c0_i32_1 = arith.constant 0 : i32
    return %c0_i32, %c0_i32_0 : i32, i32
  }
  func.func @transform_7(%arg0: i32) -> (i32, i32, i32) {
    %c0_i32 = arith.constant 0 : i32
    %c0_i32_0 = arith.constant 0 : i32
    %c0_i32_1 = arith.constant 0 : i32
    return %arg0, %c0_i32, %c0_i32_0 : i32, i32, i32
  }
}

</mosaic_0001>

<bundles_post_ra>
// kernel: tpu_custom_call.1
= control target key start
LH: loop header
LB: loop body
LE: loop exit
PB: predicated region body
PF: predicated region fallthrough
CT: control target
= control target key end

     0   :  { %12 = vsyncpa [#allocation4], 0  ;;  %s1321_s0 = inlined_call_operand.vmem [shape: f32[2,22,32], index: 0, kind: input, shape index: {}]   ;;  %s1322_s1 = inlined_call_operand.vmem [shape: f32[80,32], index: 1, kind: input, shape index: {}]   ;;  %s1323_s2 = inlined_call_operand.vmem [shape: f32[1,32], index: 2, kind: input, shape index: {}]   ;;  %s1324_s3 = inlined_call_operand.vmem [shape: f32[160,32], index: 3, kind: input, shape index: {}]   ;;  %s1325_s4 = inlined_call_operand.vmem [shape: f32[1,32], index: 4, kind: input, shape index: {}]   ;;  %s1326_s5 = inlined_call_operand.vmem [shape: f32[96,32], index: 5, kind: input, shape index: {}]   ;;  %s1327_s6 = inlined_call_operand.vmem [shape: f32[1,32], index: 6, kind: input, shape index: {}]   ;;  %s1328_s7 = inlined_call_operand.hbm [shape: f32[2,4,32], index: 7, kind: output, shape index: {}]  }
   0x1   :  { %14 = vsyncpa [#allocation4 + $0x1], 0  ;;  %s999_s24 = smov 0   ;;  %s1001_s25 = smov 0  }
   0x2   :  { %s1003_s26 = smov 0   ;;  %s1005_s27 = smov 0  }
   0x3 LB: > { %s1020_s28 = sadd.s32 4294967295, %s951_s27   ;;  %s746_s29 = sadd.s32 4294967294, %s951_s27   ;;  %s951_s27 = sphi %s1005_s27, %s1334_s27   ;;  %s947_s26 = sphi %s1003_s26, %s1333_s26   ;;  %s943_s25 = sphi %s1001_s25, %s1332_s25   ;;  %s939_s24 = sphi %s999_s24, %s1331_s24  }
   0x4   : > { %s1024_s30 = sadd.s32 1, %s951_s27   ;;  %s179_s8 = sadd.s32 1, %s947_s26 }
   0x5   : > { %s176_s9 = ssub.s32 %s951_s27, %s1024_s30  ;;  %p189_p0 = scmp.ne.s32.totalorder %s947_s26, %s943_s25 }
   0x6   : > { %p177_p1 = scmp.eq.s32.totalorder %s176_s9, 0  ;;  %p190_p2 = scmp.eq.s32.totalorder %s1020_s28, 1 }
   0x7   : > { %p195_p3 = scmp.ne.s32.totalorder %s943_s25, %s939_s24  ;;  %p196_p4 = scmp.eq.s32.totalorder %s746_s29, 1 }
   0x8   : > { %s1035_s10 = scalar_select %p177_p1, %s947_s26, %s179_s8  }
   0x9   : > { %p1037_p5 = por %p190_p2, %p189_p0  ;;  %p1041_p6 = por %p196_p4, %p195_p3 }
   0xa   : > { %p749_p7 = scmp.ge.s32.totalorder %s951_s27, 1  ;;  %p240_p8 = scmp.lt.s32.totalorder %s951_s27, 3 }
   0xc   : > { %p241_p9 = pnand %p749_p7, %p240_p8 }
   0xd   : > { %p272_p10 = scmp.lt.s32.totalorder (!%p241_p9), %s1020_s28, 1  ;;  %s955_s9 = smov (!%p241_p9), 32  }
   0xe   : > { %244 = sbr.rel (%p241_p9) target bundleno = 1007 (0x3ef), region = 48  ;;  %s269_s29 = sand.u32 (!%p241_p9), 1, %s943_s25  }
   0xf   : > { %s750_s8 = sshll.u32 (!%p241_p9), %s269_s29, 2  ;;  %s761_s14 = sshll.u32 (!%p241_p9), %s1020_s28, 6 }
  0x10   : > { %s271_s15 = scalar_lea.vmem (!%p241_p9), [#allocation3], %s750_s8  ;;  %s1285_s18 = scalar_lea.hbm (!%p241_p9), %s1328_s7, %s761_s14 }
  0x11   : > { %s674_s19 = scalar_lea.sflag (!%p241_p9), [#allocation4], %s269_s29 }
  0x13   : > { %v331_v0 = vld [vmem:[%s1322_s1 + $0x48] sm:$0xff]  ;;  %v953_v1 = vmov 0.0   ;;  %v330_v2 = vld [vmem:[%s1322_s1 + $0x40] sm:$0xff]  ;;  %s273_s17 = scalar_select %p272_p10, %s1020_s28, 1  ;;  %v329_v3 = vld [vmem:[%s1322_s1 + $0x38] sm:$0xff]  ;;  %vm954_vm0 = vmmov 0  }
  0x14   : > { %790 = vmatprep.subr.mxu0 %v953_v1  ;;  %491 = vmatprep.subr.mxu1 %v953_v1  ;;  %v328_v4 = vld [vmem:[%s1322_s1 + $0x30] sm:$0xff]  ;;  %v327_v7 = vld [vmem:[%s1322_s1 + $0x28] sm:$0xff]  ;;  %v326_v10 = vld [vmem:[%s1322_s1 + $0x20] sm:$0xff]  ;;  %vm310_vm1 = vcmask 261120   ;;  %vm314_vm2 = vcmask 392192   ;;  %vm318_vm3 = vcmask 523264  }
  0x15   : > { %791 = vmatpush3.msra.mxu0 %v331_v0  ;;  %810 = vmatprep.mubr.msk.f32.mxu0 %vm954_vm0, %v953_v1  ;;  %s846_s20 = smul.u32 24, %s273_s17  ;;  %s956_s17 = smov 64   ;;  %v325_v13 = vld [vmem:[%s1322_s1 + $0x18] sm:$0xff]  ;;  %v324_v14 = vld [vmem:[%s1322_s1 + $0x10] sm:$0xff]  ;;  %v323_v15 = vld [vmem:[%s1322_s1 + $0x8] sm:$0xff]  ;;  %vm339_vm4 = vcmask 654336  }
  0x16   : > { %792 = vmatprep.subr.mxu0 %v953_v1  ;;  %v322_v16 = vld [vmem:[%s1322_s1] sm:$0xff]  ;;  %v476_v35 = vld [vmem:[%s1324_s3 + $0x78] sm:$0xff]  ;;  %v475_v36 = vld [vmem:[%s1324_s3 + $0x70] sm:$0xff]  ;;  %vm434_vm5 = vcmask 257024   ;;  %vm459_vm6 = vcmask 785408   ;;  %vm565_vm7 = vcmask 1040384  }
  0x17   : > { %793 = vmatpush3.msra.mxu0 %v330_v2  ;;  %s1067_s23 = scalar_lea.vmem %s1321_s0, %s846_s20  ;;  %492 = vmatpush1.msra.mxu1 %v476_v35  ;;  %v474_v37 = vld [vmem:[%s1324_s3 + $0x68] sm:$0xff]  ;;  %v473_v38 = vld [vmem:[%s1324_s3 + $0x60] sm:$0xff]  ;;  %v472_v39 = vld [vmem:[%s1324_s3 + $0x58] sm:$0xff]  ;;  %s957_s20 = smov 96   ;;  %vm567_vm8 = vcmask 1044480  }
  0x18   : > { %794 = vmatprep.subr.mxu0 %v953_v1  ;;  %v280_v5 = vld [vmem:[%s1067_s23 + $0x1] sm:$0xff]  ;;  %v281_v6 = vld [vmem:[%s1067_s23 + $0x9] sm:$0xff]  ;;  %v282_v11 = vld [vmem:[%s1067_s23 + $0x11] sm:$0xf]  ;;  %493 = vmatprep.subr.mxu1 %v953_v1  ;;  %s958_s28 = smov [#allocation3]  }
  0x19   : > { %795 = vmatpush3.msra.mxu0 %v329_v3  ;;  %289 = vrot.lane.b32.xlu0 %v280_v5, %s955_s9  ;;  %v283_v8 = vld [vmem:[%s1067_s23 + $0x2] sm:$0xff]  ;;  %v284_v9 = vld [vmem:[%s1067_s23 + $0xa] sm:$0xff]  ;;  %v285_v12 = vld [vmem:[%s1067_s23 + $0x12] sm:$0xf]  ;;  %s895_s21 = sshll.u32 %s958_s28, 4  ;;  %s896_s21 = int_to_ptr.vmem [resolvable:$false] %s895_s21 }
  0x1a   : > { %796 = vmatprep.subr.mxu0 %v953_v1  ;;  %291 = vrot.lane.b32.xlu1 %v281_v6, %s955_s9  ;;  %v277_v17 = vld [vmem:[%s1067_s23] sm:$0xff]  ;;  %v278_v20 = vld [vmem:[%s1067_s23 + $0x8] sm:$0xff]  ;;  %v279_v28 = vld [vmem:[%s1067_s23 + $0x10] sm:$0xf]  ;;  %s897_s22 = scalar_lea.vmem %s896_s21, 128 }
  0x1b   : > { %797 = vmatpush3.msra.mxu0 %v328_v4  ;;  %494 = vmatpush1.msra.mxu1 %v475_v36  ;;  %v471_v40 = vld [vmem:[%s1324_s3 + $0x50] sm:$0xff]  ;;  %v470_v41 = vld [vmem:[%s1324_s3 + $0x48] sm:$0xff]  ;;  %v469_v42 = vld [vmem:[%s1324_s3 + $0x40] sm:$0xff] }
  0x1c   : > { %798 = vmatprep.subr.mxu0 %v953_v1  ;;  %495 = vmatprep.subr.mxu1 %v953_v1  ;;  %v468_v43 = vld [vmem:[%s1324_s3 + $0x38] sm:$0xff]  ;;  %v467_v44 = vld [vmem:[%s1324_s3 + $0x30] sm:$0xff]  ;;  %v466_v45 = vld [vmem:[%s1324_s3 + $0x28] sm:$0xff] }
  0x1d   : > { %799 = vmatpush3.msra.mxu0 %v327_v7  ;;  %301 = vrot.lane.b32.xlu0 %v283_v8, %s956_s17  ;;  %v465_v46 = vld [vmem:[%s1324_s3 + $0x20] sm:$0xff]  ;;  %v464_v47 = vld [vmem:[%s1324_s3 + $0x18] sm:$0xff]  ;;  %v463_v48 = vld [vmem:[%s1324_s3 + $0x10] sm:$0xff] }
  0x1e   : > { %303 = vrot.lane.b32.xlu1 %v284_v9, %s956_s17  ;;  %800 = vmatprep.subr.mxu0 %v953_v1  ;;  %v462_v49 = vld [vmem:[%s1324_s3 + $0x8] sm:$0xff]  ;;  %v461_v50 = vld [vmem:[%s1324_s3] sm:$0xff]  ;;  %v480_v51 = vld [vmem:[%s1324_s3 + $0x98] sm:$0xff] }
  0x1f   : > { %801 = vmatpush3.msra.mxu0 %v326_v10  ;;  %496 = vmatpush1.msra.mxu1 %v474_v37  ;;  %v752_v52 = vld [vmem:[%s1323_s2] ss:$0 sm:$0xff]  ;;  %v479_v62 = vld [vmem:[%s1324_s3 + $0x90] sm:$0xff]  ;;  %v478_v0 = vld [vmem:[%s1324_s3 + $0x88] sm:$0xff] }
  0x20   : > { %802 = vmatprep.subr.mxu0 %v953_v1  ;;  %497 = vmatprep.subr.mxu1 %v953_v1  ;;  %v477_v4 = vld [vmem:[%s1324_s3 + $0x80] sm:$0xff] }
  0x21   : > { %293 = vrot.lane.b32.xlu0 %v282_v11, %s955_s9  ;;  %803 = vmatpush3.msra.mxu0 %v325_v13 }
  0x22   : > { %305 = vrot.lane.b32.xlu1 %v285_v12, %s956_s17  ;;  %804 = vmatprep.subr.mxu0 %v953_v1 }
  0x23   : > { %805 = vmatpush3.msra.mxu0 %v324_v14  ;;  %498 = vmatpush1.msra.mxu1 %v473_v38 }
  0x24   : > { %806 = vmatprep.subr.mxu0 %v953_v1  ;;  %499 = vmatprep.subr.mxu1 %v953_v1 }
  0x25   : > { %807 = vmatpush3.msra.mxu0 %v323_v15  ;;  %500 = vmatpush1.msra.mxu1 %v472_v39 }
  0x26   : > { %808 = vmatprep.subr.mxu0 %v953_v1  ;;  %501 = vmatprep.subr.mxu1 %v953_v1 }
  0x27   : > { %809 = vmatpush3.msra.mxu0 %v322_v16  ;;  %502 = vmatpush1.msra.mxu1 %v471_v40  ;;  %v591_v16 = vld [vmem:[%s1326_s5 + $0x58] sm:$0xff] }
  0x28   : > { %819 = vmatprep.subr.mxu0 %v953_v1  ;;  %503 = vmatprep.subr.mxu1 %v953_v1 }
  0x29   : > { %504 = vmatpush1.msra.mxu1 %v470_v41  ;;  %v758_v41 = vld [vmem:[%s1327_s6] ss:$0 sm:$0xff] }
  0x2a   : > { %505 = vmatprep.subr.mxu1 %v953_v1 }
  0x2b   : > { %506 = vmatpush1.msra.mxu1 %v469_v42 }
  0x2c   : > { %507 = vmatprep.subr.mxu1 %v953_v1 }
  0x2d   : > { %508 = vmatpush1.msra.mxu1 %v468_v43 }
  0x2e   : > { %509 = vmatprep.subr.mxu1 %v953_v1 }
  0x2f   : > { %510 = vmatpush1.msra.mxu1 %v467_v44 }
  0x30   : > { %511 = vmatprep.subr.mxu1 %v953_v1 }
  0x31   : > { %512 = vmatpush1.msra.mxu1 %v466_v45 }
  0x32   : > { %513 = vmatprep.subr.mxu1 %v953_v1 }
  0x33   : > { %514 = vmatpush1.msra.mxu1 %v465_v46 }
  0x34   : > { %515 = vmatprep.subr.mxu1 %v953_v1 }
  0x35   : > { %516 = vmatpush1.msra.mxu1 %v464_v47 }
  0x36   : > { %517 = vmatprep.subr.mxu1 %v953_v1 }
  0x37   : > { %518 = vmatpush1.msra.mxu1 %v463_v48 }
  0x38   : > { %519 = vmatprep.subr.mxu1 %v953_v1 }
  0x39   : > { %520 = vmatpush1.msra.mxu1 %v462_v49 }
  0x3a   : > { %521 = vmatprep.subr.mxu1 %v953_v1 }
  0x3b   : > { %522 = vmatpush1.msra.mxu1 %v461_v50 }
  0x3c   : > { %547 = vmatprep.subr.mxu1 %v953_v1 }
  0x3d   : > { %548 = vmatpush2.msra.mxu1 %v480_v51 }
  0x3e   : > { %549 = vmatprep.subr.mxu1 %v953_v1 }
  0x3f   : > { %550 = vmatpush2.msra.mxu1 %v479_v62 }
  0x40   : > { %551 = vmatprep.subr.mxu1 %v953_v1 }
  0x41   : > { %552 = vmatpush2.msra.mxu1 %v478_v0 }
  0x42   : > { %553 = vmatprep.subr.mxu1 %v953_v1 }
  0x43   : > { %554 = vmatpush2.msra.mxu1 %v477_v4 }
  0x8b   : > { %v290_v18 = vpop.permute.xlu0 %289 }
  0x8c   : > { %v292_v19 = vpop.permute.xlu1 %291  ;;  %v311_v21 = vsel %vm310_vm1, %v277_v17, %v290_v18  ;;  %v590_v17 = vld [vmem:[%s1326_s5 + $0x50] sm:$0xff] }
  0x8d   : > { %v312_v22 = vsel %vm310_vm1, %v278_v20, %v292_v19  ;;  %v315_v23 = vsel %vm314_vm2, %v311_v21, %v290_v18  ;;  %v589_v18 = vld [vmem:[%s1326_s5 + $0x48] sm:$0xff]  ;;  %v587_v20 = vld [vmem:[%s1326_s5 + $0x38] sm:$0xff]  ;;  %v586_v21 = vld [vmem:[%s1326_s5 + $0x30] sm:$0xff] }
  0x8e   : > { %v316_v27 = vsel %vm314_vm2, %v312_v22, %v292_v19  ;;  %v588_v19 = vld [vmem:[%s1326_s5 + $0x40] sm:$0xff]  ;;  %v585_v22 = vld [vmem:[%s1326_s5 + $0x28] sm:$0xff] }
  0x8f   : > { %v302_v24 = vpop.permute.xlu0 %301 }
  0x90   : > { %v304_v25 = vpop.permute.xlu1 %303  ;;  %v319_v26 = vsel %vm318_vm3, %v315_v23, %v302_v24  ;;  %v584_v23 = vld [vmem:[%s1326_s5 + $0x20] sm:$0xff]  ;;  %v583_v24 = vld [vmem:[%s1326_s5 + $0x18] sm:$0xff] }
  0x91   : > { %811 = vmatmul.mubr.msk.f32.vlgmr.msra.gmra.mxu0 %vm339_vm4, %v319_v26  ;;  %v320_v31 = vsel %vm318_vm3, %v316_v27, %v304_v25  ;;  %v582_v25 = vld [vmem:[%s1326_s5 + $0x10] sm:$0xff]  ;;  %v581_v26 = vld [vmem:[%s1326_s5 + $0x8] sm:$0xff]  ;;  %v756_v27 = vld [vmem:[%s1325_s4] ss:$0 sm:$0xff] }
  0x92   : > { %813 = vmatprep.mubr.msk.f32.mxu0 %vm954_vm0, %v953_v1  ;;  %820 = vmatpush3.msra.mxu0 %v591_v16 }
  0x93   : > { %v294_v29 = vpop.permute.xlu0 %293  ;;  %821 = vmatprep.subr.mxu0 %v953_v1 }
  0x94   : > { %v306_v30 = vpop.permute.xlu1 %305  ;;  %v313_v32 = vsel %vm310_vm1, %v279_v28, %v294_v29  ;;  %822 = vmatpush3.msra.mxu0 %v590_v17  ;;  %v580_v28 = vld [vmem:[%s1326_s5] sm:$0xff] }
  0x95   : > { %v317_v33 = vsel %vm314_vm2, %v313_v32, %v294_v29  ;;  %814 = vmatmul.mubr.msk.f32.gmra.mxu0 %vm339_vm4, %v320_v31  ;;  %823 = vmatprep.subr.mxu0 %v953_v1 }
  0x96   : > { %v321_v34 = vsel %vm318_vm3, %v317_v33, %v306_v30  ;;  %816 = vmatprep.mubr.msk.f32.mxu0 %vm954_vm0, %v953_v1  ;;  %824 = vmatpush3.msra.mxu0 %v589_v18 }
  0x97   : > { %825 = vmatprep.subr.mxu0 %v953_v1 }
  0x98   : > { %826 = vmatpush3.msra.mxu0 %v588_v19 }
  0x99   : > { %817 = vmatmul.mubr.msk.f32.gmra.mxu0 %vm339_vm4, %v321_v34  ;;  %827 = vmatprep.subr.mxu0 %v953_v1 }
  0x9a   : > { %843 = vmatprep.mubr.msk.f32.mxu0 %vm954_vm0, %v953_v1  ;;  %828 = vmatpush3.msra.mxu0 %v587_v20 }
  0x9b   : > { %829 = vmatprep.subr.mxu0 %v953_v1 }
  0x9c   : > { %830 = vmatpush3.msra.mxu0 %v586_v21 }
  0x9d   : > { %831 = vmatprep.subr.mxu0 %v953_v1 }
  0x9e   : > { %832 = vmatpush3.msra.mxu0 %v585_v22 }
  0x9f   : > { %833 = vmatprep.subr.mxu0 %v953_v1 }
  0xa0   : > { %834 = vmatpush3.msra.mxu0 %v584_v23 }
  0xa1   : > { %835 = vmatprep.subr.mxu0 %v953_v1 }
  0xa2   : > { %836 = vmatpush3.msra.mxu0 %v583_v24 }
  0xa3   : > { %837 = vmatprep.subr.mxu0 %v953_v1 }
  0xa4   : > { %838 = vmatpush3.msra.mxu0 %v582_v25 }
  0xa5   : > { %839 = vmatprep.subr.mxu0 %v953_v1 }
  0xa6   : > { %840 = vmatpush3.msra.mxu0 %v581_v26 }
  0xa7   : > { %841 = vmatprep.subr.mxu0 %v953_v1 }
  0xa8   : > { %842 = vmatpush3.msra.mxu0 %v580_v28 }
 0x151   : > { %v415_v53 = vpop.f32.mrf.mxu0 }
 0x152   : > { %v416_v54 = vadd.f32 %v752_v52, %v415_v53 }
 0x153   : > { %v812_v55 = vpop.f32.mrf.mxu0 }
 0x154   : > { %v429_v56 = vmax.f32 %v416_v54, 0.0 }
 0x155   : > { %v420_v57 = vpop.f32.mrf.mxu0 }
 0x156   : > { %432 = vst.msk [vmem:[#allocation2] sm:$0xff] %vm310_vm1, %v429_v56  ;;  %v421_v58 = vadd.f32 %v752_v52, %v420_v57 }
 0x157   : > { %v815_v59 = vpop.f32.mrf.mxu0 }
 0x158   : > { %v430_v60 = vmax.f32 %v421_v58, 0.0 }
 0x159   : > { %v425_v61 = vpop.f32.mrf.mxu0 }
 0x15a   : > { %433 = vst.msk [vmem:[#allocation2 + $0x8] sm:$0xff] %vm310_vm1, %v430_v60  ;;  %v426_v63 = vadd.f32 %v752_v52, %v425_v61 }
 0x15b   : > { %v818_v2 = vpop.f32.mrf.mxu0 }
 0x15c   : > { %v431_v3 = vmax.f32 %v426_v63, 0.0 }
 0x15e   : > { %435 = vst.msk [vmem:[#allocation2 + $0x10] sm:$0xf] %vm434_vm5, %v431_v3 }
 0x161   : > { %v436_v9 = vld [vmem:[#allocation2] ss:$5 sm:$0xf] }
 0x165   : > { %v444_v5 = vld [vmem:[#allocation2 + $0x4] ss:$5 sm:$0xf]  ;;  %v440_v6 = vld [vmem:[#allocation2 + $0x2] ss:$5 sm:$0xf] }
 0x166   : > { %757 = vmatprep.mubr.msk.f32.mxu1 %vm310_vm1, %v444_v5  ;;  %450 = vrot.lane.b32.xlu1 %v440_v6, %s956_s17  ;;  %v438_v7 = vld [vmem:[#allocation2 + $0x1] ss:$5 sm:$0xf]  ;;  %v442_v8 = vld [vmem:[#allocation2 + $0x3] ss:$5 sm:$0xf] }
 0x167   : > { %446 = vrot.lane.b32.xlu0 %v438_v7, %s955_s9 }
 0x16b   : > { %454 = vrot.lane.b32.xlu0 %v442_v8, %s957_s20 }
 0x1d8   : > { %v451_v11 = vpop.permute.xlu1 %450 }
 0x1d9   : > { %v447_v10 = vpop.permute.xlu0 %446 }
 0x1da   : > { %v457_v12 = vsel %vm310_vm1, %v436_v9, %v447_v10 }
 0x1db   : > { %v458_v14 = vsel %vm318_vm3, %v457_v12, %v451_v11 }
 0x1dd   : > { %v455_v13 = vpop.permute.xlu0 %454 }
 0x1de   : > { %v460_v15 = vsel %vm459_vm6, %v458_v14, %v455_v13 }
 0x1df   : > { %556 = vmatmul.mubr.f32.vlgmr.msra.gmra.mxu1 %v460_v15 }
 0x29f   : > { %v557_v29 = vpop.f32.mrf.mxu1 }
 0x2a0   : > { %v558_v30 = vadd.f32 %v756_v27, %v557_v29 }
 0x2a1   : > { %v559_v31 = vpop.f32.mrf.mxu1 }
 0x2a2   : > { %v561_v32 = vmax.f32 %v558_v30, 0.0 }
 0x2a4   : > { %v563_v33 = vrot.slane %v561_v32, 7 }
 0x2a6   : > { %v566_v34 = vsel %vm565_vm7, 0.0, %v563_v33 }
 0x2a7   : > { %v568_v1 = vsel %vm567_vm8, %v566_v34, 0.0 }
 0x2a8   : > { %v574_v35 = vrot.slane %v568_v1, 2  ;;  %v570_v36 = vrot.slane %v568_v1, 1 }
 0x2aa   : > { %575 = vrot.lane.b32.xlu0 %v574_v35, %s956_s17  ;;  %571 = vrot.lane.b32.xlu1 %v570_v36, %s955_s9  ;;  %s687_s17 = sshll.u32 %s271_s15, 4  ;;  %s688_s17 = int_to_ptr.vmem [resolvable:$true] %s687_s17 }
 0x2ab   : > { %s891_s20 = scalar_lea.vmem %s688_s17, 64  ;;  %p898_p0 = scmp.lt.s32.totalorder %s688_s17, %s896_s21 }
 0x2ac   : > { %p892_p11 = scmp.ne.s32.totalorder %s688_s17, %s891_s20  ;;  %p899_p1 = scmp.lt.s32.totalorder %s897_s22, %s891_s20 }
 0x2ae   : > { %p893_p12 = pnand %p892_p11, %p1037_p5  ;;  %p900_p2 = por %p899_p1, %p898_p0 }
 0x2b0   : > { %p894_p13 = pneg %p893_p12 }
 0x2b2   : > { %p901_p3 = pnand %p900_p2, %p894_p13 }
 0x31c   : > { %v576_v37 = vpop.permute.xlu0 %575  ;;  %v572_v38 = vpop.permute.xlu1 %571 }
 0x31d   : > { %v578_v39 = vsel %vm310_vm1, %v568_v1, %v572_v38 }
 0x31e   : > { %v579_v40 = vsel %vm318_vm3, %v578_v39, %v576_v37 }
 0x31f   : > { %844 = vmatmul.mubr.msk.f32.vlgmr.msra.gmra.mxu0 %vm459_vm6, %v579_v40 }
 0x3df   : > { %v668_v42 = vpop.f32.mrf.mxu0 }
 0x3e0   : > { %v669_v43 = vadd.f32 %v758_v41, %v668_v42 }
 0x3e1   : > { %v845_v44 = vpop.f32.mrf.mxu0 }
 0x3e2   : > { %672 = vst.msk [vmem:[%s271_s15] sm:$0xf] %vm434_vm5, %v669_v43 }
 0x3e3   : > { %904 = shalt.err (!%p901_p3)
}
 0x3e4   : > { %s905_s8 = scalar_lea.hbm %s1285_s18, 64  ;;  %s909_s23 = scalar_lea.hbm %s1328_s7, 128 }
 0x3e5   : > { %p906_p4 = scmp.ne.s32.totalorder %s1285_s18, %s905_s8  ;;  %p910_p9 = scmp.lt.s32.totalorder %s1285_s18, %s1328_s7 }
 0x3e6   : > { %p911_p10 = scmp.lt.s32.totalorder %s909_s23, %s905_s8 }
 0x3e7   : > { %p907_p7 = pnand %p906_p4, %p1037_p5 }
 0x3e8   : > { %p912_p11 = por %p911_p10, %p910_p9 }
 0x3e9   : > { %p908_p8 = pneg %p907_p7 }
 0x3eb   : > { %p913_p12 = pnand %p912_p11, %p908_p8 }
 0x3ed   : > { %916 = shalt.err (!%p913_p12)
}
 0x3ee   : > { %847 = dma.vmem_to_hbm [thread:$0]  (%p1037_p5), %s688_s17, 64, %s1285_s18, %s674_s19  }
 0x3ef PF: > { %p853_p13 = scmp.ge.s32.totalorder %s951_s27, 2  ;;  %s699_s9 = sand.u32 1, %s939_s24  }
 0x3f0   : > { %s700_s16 = scalar_lea.sflag [#allocation4], %s699_s9 }
 0x3f1   : > { %p850_p0 = pnand %p853_p13, %p1041_p6 }
 0x3f3   : > { %p851_p1 = pneg %p850_p0 }
 0x3f5   : > { %934 = dma.done.wait (%p851_p1), %s700_s16, 64  }
 0x3f6   : > { %936 = vsyncadd (%p851_p1), %s700_s16, 4294967232  ;;  %p17_p2 = scmp.ge.s32.totalorder %s1024_s30, 4   ;;  %s1331_s24 = smov %s943_s25 }
 0x3f7   : > { %s1332_s25 = smov %s947_s26  ;;  %s1333_s26 = smov %s1035_s10 }
 0x3f8   : > { %s1334_s27 = smov %s1024_s30  ;;  %19 = sbr.rel (!%p17_p2) target bundleno = 3 (0x3), region = 87 }
 0x3fd   :  { %705 = vsyncpa [#allocation4], 1 }
 0x3fe   :  { %707 = vsyncpa [#allocation4 + $0x1], 1 }

</bundles_post_ra>
